<compile_context>
chip_gen: v5e
topology: v5e:2x2
jax: 0.10.0
libtpu: 0.0.40
codegen_flags: <defaults>
</compile_context>

<pallas_src>
import jax
import jax.numpy as jnp
from jax.experimental import pallas as pl
from jax.experimental.pallas import tpu as pltpu

_MIB = 1024 * 1024


def _caption_embedder_kernel(drop_ref,                        # (B,) int32, SMEM (prefetch)
                             cap_ref, yemb_ref,               # (1,1,tq,C), (tq,C)
                             w1_ref, b1_ref, w2_ref, b2_ref,  # (C,H) bf16, (1,H) f32, (H,H) bf16, (1,H) f32
                             o_ref):                          # (1,1,tq,H)
    b = pl.program_id(1)                                      # grid = (token_tiles, batch)

    # ---- token_drop: scalar SMEM predicate, splatted vselect (no full-tile mask) ----
    pred = drop_ref[b] > 0
    x = jnp.where(pred, yemb_ref[...], cap_ref[0, 0])         # (tq, C), caption dtype

    # ---- Mlp: fc1 -> GELU(tanh) -> fc2, bf16 operands, f32 MXU accumulation ----
    x = x.astype(w1_ref.dtype)                                # single downcast after the select
    h = jnp.dot(x, w1_ref[...], preferred_element_type=jnp.float32) + b1_ref[...]
    h = jax.nn.gelu(h, approximate=True)                      # GELU(tanh) in f32 (EUP)
    h = h.astype(w2_ref.dtype)
    out = jnp.dot(h, w2_ref[...], preferred_element_type=jnp.float32) + b2_ref[...]

    o_ref[...] = out[None, None].astype(o_ref.dtype)


def _sublane_multiple(dtype):
    """Second-minor tile multiple for the given storage dtype (sublane packing)."""
    return {4: 8, 2: 16, 1: 32}.get(jnp.dtype(dtype).itemsize, 8)


def _pick_token_tile(T, target, multiple, min_tiles, footprint_fn, budget_bytes):
    """Largest divisor of T that is a multiple of `multiple`, <= target, fits the VMEM
    budget and yields >= min_tiles grid steps; falls back gracefully."""
    if T % multiple != 0:
        # Only legal tile is the full extent (e.g. T=300 with bf16); tiling disabled.
        return T
    divisors = [tq for tq in range(multiple, T + 1, multiple) if T % tq == 0]
    cands = [tq for tq in divisors
             if tq <= target and (T // tq) >= min_tiles and footprint_fn(tq) <= budget_bytes]
    if cands:
        return max(cands)
    cands = [tq for tq in divisors if (T // tq) >= min_tiles]
    if cands:
        return min(cands)  # smallest footprint that still satisfies min_tiles
    return T


def caption_embedder_forward(caption, y_embedding, w1, b1, w2, b2, drop_ids, *,
                             matmul_dtype=jnp.bfloat16,
                             token_block=512,
                             vmem_budget_bytes=56 * _MIB):
    """caption: (B,1,T,C); y_embedding: (T,C); w1:(C,H) b1:(H,) w2:(H,H) b2:(H,);
    drop_ids: (B,) int (1 => replace that sample's tokens with y_embedding)."""
    B, one, T, C = caption.shape
    assert one == 1
    H = w1.shape[1]

    cap_dtype = caption.dtype
    cap_bytes = jnp.dtype(cap_dtype).itemsize
    w_bytes = jnp.dtype(matmul_dtype).itemsize

    def footprint(tq):
        weights = (C * H + H * H) * w_bytes + 2 * H * 4        # single-buffered (Buffered(1))
        streamed = 2 * tq * C * cap_bytes                      # caption tile, double-buffered
        streamed += 2 * tq * C * cap_bytes                     # y_embedding tile
        streamed += 2 * tq * H * cap_bytes                     # output tile
        return weights + streamed

    multiple = _sublane_multiple(cap_dtype)
    min_tiles = 2 if B == 1 else 1                             # keep v7x's 2nd TC busy at B==1
    tq = _pick_token_tile(T, token_block, multiple, min_tiles, footprint, vmem_budget_bytes)
    n_t = T // tq

    vmem_limit = int(min(100 * _MIB, max(32 * _MIB, footprint(tq) + 8 * _MIB)))

    # Host-side prep (hoisted out of the kernel): bf16 weights, f32 biases, matching y dtype.
    w1c = w1.astype(matmul_dtype)
    w2c = w2.astype(matmul_dtype)
    b1c = b1.astype(jnp.float32).reshape(1, H)
    b2c = b2.astype(jnp.float32).reshape(1, H)
    yemb = y_embedding.astype(cap_dtype)
    drop_ids = drop_ids.astype(jnp.int32)

    resident = dict(pipeline_mode=pl.Buffered(1))              # grid-invariant -> single buffer

    return pl.pallas_call(
        _caption_embedder_kernel,
        out_shape=jax.ShapeDtypeStruct((B, 1, T, H), cap_dtype),
        grid_spec=pltpu.PrefetchScalarGridSpec(
            num_scalar_prefetch=1,                             # drop_ids -> SMEM
            grid=(n_t, B),                                     # batch innermost: y tile DMA'd n_t times
            in_specs=[
                pl.BlockSpec((1, 1, tq, C), lambda t, b, drop: (b, 0, t, 0)),   # caption tile
                pl.BlockSpec((tq, C),       lambda t, b, drop: (t, 0)),          # y_embedding tile
                pl.BlockSpec((C, H),        lambda t, b, drop: (0, 0), **resident),  # w1 (resident)
                pl.BlockSpec((1, H),        lambda t, b, drop: (0, 0), **resident),  # b1
                pl.BlockSpec((H, H),        lambda t, b, drop: (0, 0), **resident),  # w2 (resident)
                pl.BlockSpec((1, H),        lambda t, b, drop: (0, 0), **resident),  # b2
            ],
            out_specs=pl.BlockSpec((1, 1, tq, H), lambda t, b, drop: (b, 0, t, 0)),
        ),
        compiler_params=pltpu.CompilerParams(
            dimension_semantics=("parallel", "parallel"),
            vmem_limit_bytes=vmem_limit),
    )(drop_ids, caption, yemb, w1c, b1c, w2c, b2c)


def caption_embedder_apply(caption, y_embedding, w1, b1, w2, b2, *,
                           uncond_prob, train, force_drop_ids=None, rng=None, **kwargs):
    """Mirrors CaptionEmbedder.forward(caption, train, force_drop_ids)."""
    B = caption.shape[0]
    if train:
        assert caption.shape[2:] == y_embedding.shape
    use_dropout = uncond_prob > 0
    if (train and use_dropout) or (force_drop_ids is not None):
        if force_drop_ids is not None:
            drop_ids = (force_drop_ids == 1).astype(jnp.int32)
        else:
            # TODO(synk): stochastic CFG drop sampling (torch.rand < uncond_prob) stays in plain JAX.
            drop_ids = (jax.random.uniform(rng, (B,)) < uncond_prob).astype(jnp.int32)
    else:
        drop_ids = jnp.zeros((B,), dtype=jnp.int32)
    return caption_embedder_forward(caption, y_embedding, w1, b1, w2, b2, drop_ids, **kwargs)


def caption_embedder_reference(caption, y_embedding, w1, b1, w2, b2, drop_ids,
                               matmul_dtype=jnp.bfloat16):
    """Plain-JAX reference matching the kernel's compute path (bf16 matmuls, f32 accum)."""
    cap = jnp.where(drop_ids[:, None, None, None] > 0,
                    y_embedding.astype(caption.dtype), caption)
    x = cap.astype(matmul_dtype)
    h = jnp.matmul(x, w1.astype(matmul_dtype),
                   preferred_element_type=jnp.float32) + b1.astype(jnp.float32)
    h = jax.nn.gelu(h, approximate=True).astype(matmul_dtype)
    out = jnp.matmul(h, w2.astype(matmul_dtype),
                     preferred_element_type=jnp.float32) + b2.astype(jnp.float32)
    return out.astype(caption.dtype)


if __name__ == "__main__":
    # Small, module-consistent shapes: (B, 1, token_num, in_channels) -> (B, 1, token_num, hidden)
    B, T, C, H = 2, 8, 16, 32

    key = jax.random.PRNGKey(0)
    kcap, kemb, k1, k2, k3, k4 = jax.random.split(key, 6)

    caption = jax.random.normal(kcap, (B, 1, T, C), dtype=jnp.float32)
    y_embedding = jax.random.normal(kemb, (T, C), dtype=jnp.float32) / (C ** 0.5)

    # nn.Linear weights stored transposed: (in, out)
    w1 = jax.random.normal(k1, (C, H), dtype=jnp.float32) * 0.02
    b1 = jax.random.normal(k2, (H,), dtype=jnp.float32) * 0.02
    w2 = jax.random.normal(k3, (H, H), dtype=jnp.float32) * 0.02
    b2 = jax.random.normal(k4, (H,), dtype=jnp.float32) * 0.02

    # Deterministic CFG dropout: keep sample 0, drop sample 1.
    force_drop_ids = jnp.array([0, 1], dtype=jnp.int32)

    out = caption_embedder_apply(caption, y_embedding, w1, b1, w2, b2,
                                 uncond_prob=0.1, train=True,
                                 force_drop_ids=force_drop_ids)
    out = jax.block_until_ready(out)

    drop_ids = (force_drop_ids == 1).astype(jnp.int32)
    ref = caption_embedder_reference(caption, y_embedding, w1, b1, w2, b2, drop_ids)
    assert out.shape == (B, 1, T, H)
    assert jnp.allclose(out, ref, atol=5e-3, rtol=5e-2)

    print("KERNEL_OK")
</pallas_src>

<mosaic_0001>
module attributes {stable_mosaic.version = 11 : i64} {
  func.func @_caption_embedder_kernel(%arg0: i32, %arg1: i32, %arg2: memref<2xi32, #tpu.memory_space<smem>>, %arg3: memref<1x1x8x16xf32, #tpu.memory_space<vmem>>, %arg4: memref<8x16xf32, #tpu.memory_space<vmem>>, %arg5: memref<16x32xbf16, #tpu.memory_space<vmem>>, %arg6: memref<1x32xf32, #tpu.memory_space<vmem>>, %arg7: memref<32x32xbf16, #tpu.memory_space<vmem>>, %arg8: memref<1x32xf32, #tpu.memory_space<vmem>>, %arg9: memref<1x1x8x32xf32, #tpu.memory_space<vmem>>) attributes {dimension_semantics = [#tpu.dimension_semantics<parallel>, #tpu.dimension_semantics<parallel>], iteration_bounds = array<i64: 1, 2>, scalar_prefetch = 1 : i64, scratch_operands = 0 : i64, tpu.core_type = #tpu.core_type<tc>, window_params = [{transform_indices = @transform_0, window_bounds = array<i64: 1, 1, 8, 16>}, {transform_indices = @transform_1, window_bounds = array<i64: 8, 16>}, {pipeline_mode = #tpu.pipeline_mode<synchronous>, transform_indices = @transform_2, window_bounds = array<i64: 16, 32>}, {pipeline_mode = #tpu.pipeline_mode<synchronous>, transform_indices = @transform_3, window_bounds = array<i64: 1, 32>}, {pipeline_mode = #tpu.pipeline_mode<synchronous>, transform_indices = @transform_4, window_bounds = array<i64: 32, 32>}, {pipeline_mode = #tpu.pipeline_mode<synchronous>, transform_indices = @transform_5, window_bounds = array<i64: 1, 32>}, {transform_indices = @transform_6, window_bounds = array<i64: 1, 1, 8, 32>}]} {
    %0 = arith.index_cast %arg1 : i32 to index
    %1 = memref.load %arg2[%0] : memref<2xi32, #tpu.memory_space<smem>>
    %c0_i32 = arith.constant 0 : i32
    %2 = arith.cmpi sgt, %1, %c0_i32 : i32
    %c0 = arith.constant 0 : index
    %c0_0 = arith.constant 0 : index
    %3 = vector.load %arg4[%c0, %c0_0] : memref<8x16xf32, #tpu.memory_space<vmem>>, vector<8x16xf32>
    %c0_1 = arith.constant 0 : index
    %c0_2 = arith.constant 0 : index
    %c0_3 = arith.constant 0 : index
    %c0_4 = arith.constant 0 : index
    %4 = vector.load %arg3[%c0_1, %c0_2, %c0_3, %c0_4] : memref<1x1x8x16xf32, #tpu.memory_space<vmem>>, vector<1x1x8x16xf32>
    %5 = vector.shape_cast %4 : vector<1x1x8x16xf32> to vector<8x16xf32>
    %6 = arith.select %2, %3, %5 : vector<8x16xf32>
    %7 = arith.truncf %6 : vector<8x16xf32> to vector<8x16xbf16>
    %c0_5 = arith.constant 0 : index
    %c0_6 = arith.constant 0 : index
    %8 = vector.load %arg5[%c0_5, %c0_6] : memref<16x32xbf16, #tpu.memory_space<vmem>>, vector<16x32xbf16>
    %cst = arith.constant dense<0.000000e+00> : vector<8x32xf32>
    %9 = tpu.matmul %7, %8, %cst {dimension_numbers = #tpu.dot_dimension_numbers<[1], [0], [0], [1], [0, 0, 1, 1], [], []>} : vector<8x16xbf16>, vector<16x32xbf16>, vector<8x32xf32> -> vector<8x32xf32>
    %c0_7 = arith.constant 0 : index
    %c0_8 = arith.constant 0 : index
    %10 = vector.load %arg6[%c0_7, %c0_8] : memref<1x32xf32, #tpu.memory_space<vmem>>, vector<1x32xf32>
    %11 = vector.broadcast %10 : vector<1x32xf32> to vector<8x32xf32>
    %12 = arith.addf %9, %11 : vector<8x32xf32>
    %13 = arith.mulf %12, %12 : vector<8x32xf32>
    %14 = arith.mulf %12, %13 : vector<8x32xf32>
    %cst_9 = arith.constant 4.471500e-02 : f32
    %15 = vector.broadcast %cst_9 : f32 to vector<8x32xf32>
    %16 = arith.mulf %15, %14 : vector<8x32xf32>
    %17 = arith.addf %12, %16 : vector<8x32xf32>
    %cst_10 = arith.constant 0.797884583 : f32
    %18 = vector.broadcast %cst_10 : f32 to vector<8x32xf32>
    %19 = arith.mulf %18, %17 : vector<8x32xf32>
    %20 = math.tanh %19 : vector<8x32xf32>
    %cst_11 = arith.constant 1.000000e+00 : f32
    %21 = vector.broadcast %cst_11 : f32 to vector<8x32xf32>
    %22 = arith.addf %21, %20 : vector<8x32xf32>
    %cst_12 = arith.constant 5.000000e-01 : f32
    %23 = vector.broadcast %cst_12 : f32 to vector<8x32xf32>
    %24 = arith.mulf %23, %22 : vector<8x32xf32>
    %25 = arith.mulf %12, %24 : vector<8x32xf32>
    %26 = arith.truncf %25 : vector<8x32xf32> to vector<8x32xbf16>
    %c0_13 = arith.constant 0 : index
    %c0_14 = arith.constant 0 : index
    %27 = vector.load %arg7[%c0_13, %c0_14] : memref<32x32xbf16, #tpu.memory_space<vmem>>, vector<32x32xbf16>
    %cst_15 = arith.constant dense<0.000000e+00> : vector<8x32xf32>
    %28 = tpu.matmul %26, %27, %cst_15 {dimension_numbers = #tpu.dot_dimension_numbers<[1], [0], [0], [1], [0, 0, 1, 1], [], []>} : vector<8x32xbf16>, vector<32x32xbf16>, vector<8x32xf32> -> vector<8x32xf32>
    %c0_16 = arith.constant 0 : index
    %c0_17 = arith.constant 0 : index
    %29 = vector.load %arg8[%c0_16, %c0_17] : memref<1x32xf32, #tpu.memory_space<vmem>>, vector<1x32xf32>
    %30 = vector.broadcast %29 : vector<1x32xf32> to vector<8x32xf32>
    %31 = arith.addf %28, %30 : vector<8x32xf32>
    %32 = vector.shape_cast %31 : vector<8x32xf32> to vector<1x1x8x32xf32>
    %c0_18 = arith.constant 0 : index
    %c0_19 = arith.constant 0 : index
    %c0_20 = arith.constant 0 : index
    %c0_21 = arith.constant 0 : index
    %33 = vector.load %arg9[%c0_18, %c0_19, %c0_20, %c0_21] : memref<1x1x8x32xf32, #tpu.memory_space<vmem>>, vector<1x1x8x32xf32>
    tpu.vector_store %arg9[%c0_18, %c0_19, %c0_20, %c0_21], %32 {strides = array<i32>} : memref<1x1x8x32xf32, #tpu.memory_space<vmem>>, vector<1x1x8x32xf32>,
    return
  }
  func.func @transform_0(%arg0: i32, %arg1: i32, %arg2: memref<2xi32, #tpu.memory_space<smem>>) -> (i32, i32, i32, i32) {
    %c0_i32 = arith.constant 0 : i32
    %c0_i32_0 = arith.constant 0 : i32
    %c0_i32_1 = arith.constant 0 : i32
    return %arg1, %c0_i32, %arg0, %c0_i32_0 : i32, i32, i32, i32
  }
  func.func @transform_1(%arg0: i32, %arg1: i32, %arg2: memref<2xi32, #tpu.memory_space<smem>>) -> (i32, i32) {
    %c0_i32 = arith.constant 0 : i32
    %c0_i32_0 = arith.constant 0 : i32
    return %arg0, %c0_i32 : i32, i32
  }
  func.func @transform_2(%arg0: i32, %arg1: i32, %arg2: memref<2xi32, #tpu.memory_space<smem>>) -> (i32, i32) {
    %c0_i32 = arith.constant 0 : i32
    %c0_i32_0 = arith.constant 0 : i32
    %c0_i32_1 = arith.constant 0 : i32
    return %c0_i32, %c0_i32_0 : i32, i32
  }
  func.func @transform_3(%arg0: i32, %arg1: i32, %arg2: memref<2xi32, #tpu.memory_space<smem>>) -> (i32, i32) {
    %c0_i32 = arith.constant 0 : i32
    %c0_i32_0 = arith.constant 0 : i32
    %c0_i32_1 = arith.constant 0 : i32
    return %c0_i32, %c0_i32_0 : i32, i32
  }
  func.func @transform_4(%arg0: i32, %arg1: i32, %arg2: memref<2xi32, #tpu.memory_space<smem>>) -> (i32, i32) {
    %c0_i32 = arith.constant 0 : i32
    %c0_i32_0 = arith.constant 0 : i32
    %c0_i32_1 = arith.constant 0 : i32
    return %c0_i32, %c0_i32_0 : i32, i32
  }
  func.func @transform_5(%arg0: i32, %arg1: i32, %arg2: memref<2xi32, #tpu.memory_space<smem>>) -> (i32, i32) {
    %c0_i32 = arith.constant 0 : i32
    %c0_i32_0 = arith.constant 0 : i32
    %c0_i32_1 = arith.constant 0 : i32
    return %c0_i32, %c0_i32_0 : i32, i32
  }
  func.func @transform_6(%arg0: i32, %arg1: i32, %arg2: memref<2xi32, #tpu.memory_space<smem>>) -> (i32, i32, i32, i32) {
    %c0_i32 = arith.constant 0 : i32
    %c0_i32_0 = arith.constant 0 : i32
    %c0_i32_1 = arith.constant 0 : i32
    return %arg1, %c0_i32, %arg0, %c0_i32_0 : i32, i32, i32, i32
  }
}

</mosaic_0001>

<bundles_post_ra>
// kernel: tpu_custom_call.1
= control target key start
LH: loop header
LB: loop body
LE: loop exit
PB: predicated region body
PF: predicated region fallthrough
CT: control target
= control target key end

     0   :  { %s927_s27 = smov [#allocation3]   ;;  %s1158_s0 = inlined_call_operand.hbm [shape: s32[2], index: 0, kind: input, shape index: {}]   ;;  %s1159_s1 = inlined_call_operand.hbm [shape: f32[2,1,8,16], index: 1, kind: input, shape index: {}]   ;;  %s1160_s2 = inlined_call_operand.hbm [shape: f32[8,16], index: 2, kind: input, shape index: {}]   ;;  %s1161_s3 = inlined_call_operand.hbm [shape: bf16[16,32], index: 3, kind: input, shape index: {}]   ;;  %s1162_s4 = inlined_call_operand.vmem [shape: f32[1,32], index: 4, kind: input, shape index: {}]   ;;  %s1163_s5 = inlined_call_operand.hbm [shape: bf16[32,32], index: 5, kind: input, shape index: {}]   ;;  %s1164_s6 = inlined_call_operand.vmem [shape: f32[1,32], index: 6, kind: input, shape index: {}]   ;;  %s1165_s7 = inlined_call_operand.hbm [shape: f32[2,1,8,32], index: 7, kind: output, shape index: {}]  }
   0x1   :  { %1166 = sst [smem:[#allocation18_spill]] %s1160_s2  ;;  %s13_s26 = sshll.u32 %s1158_s0, 4  ;;  %s14_s26 = int_to_ptr.hbm [resolvable:$true] %s13_s26 }
   0x2   :  { %1167 = sst [smem:[#allocation19_spill]] %s1161_s3 }
   0x3   :  { %16 = dma.hbm_to_smem %s14_s26, 16, %s927_s27, [#allocation2] }
   0x4   :  { %885 = dma.done.wait [#allocation2], 16 }
   0x5   :  { %886 = vsyncadd [#allocation2], 4294967280 }
   0x6   :  { %19 = sfence }
   0x7   :  { %20 = vsyncpa [#allocation5], 0 }
   0x8   :  { %22 = vsyncpa [#allocation5 + $0x1], 0 }
   0x9   :  { %23 = vsyncpa [#allocation8], 0 }
   0xa   :  { %24 = vsyncpa [#allocation11], 0 }
   0xb   :  { %25 = vsyncpa [#allocation6], 0 }
   0xc   :  { %27 = vsyncpa [#allocation6 + $0x1], 0  ;;  %s976_s28 = smov 0   ;;  %s978_s29 = smov 0  }
   0xd   :  { %s980_s30 = smov 0   ;;  %s982_s8 = smov 0  }
   0xe   :  { %s984_s0 = smov 0   ;;  %s986_s9 = smov 0  }
   0xf LB: > { %s565_s10 = sadd.s32 4294967295, %s925_s9   ;;  %s566_s11 = sadd.s32 4294967294, %s925_s9   ;;  %s925_s9 = sphi %s986_s9, %s33_s9   ;;  %s921_s0 = sphi %s984_s0, %s1182_s0   ;;  %s917_s8 = sphi %s982_s8, %s1181_s8   ;;  %s913_s30 = sphi %s980_s30, %s1180_s30   ;;  %s909_s29 = sphi %s978_s29, %s1179_s29   ;;  %s905_s28 = sphi %s976_s28, %s1178_s28  }
  0x10   : > { %p67_p0 = scmp.ne.s32.totalorder %s909_s29, %s905_s28  ;;  %p1010_p1 = scmp.eq.s32.totalorder %s565_s10, 0 }
  0x11   : > { %p1014_p2 = scmp.eq.s32.totalorder %s565_s10, 1  ;;  %p209_p3 = scmp.eq.s32.totalorder %s566_s11, 1 }
  0x12   : > { %p1020_p4 = por %p1010_p1, %p67_p0  ;;  %p567_p5 = scmp.ge.s32.totalorder %s925_s9, 1 }
  0x13   : > { %p1025_p6 = por %p209_p3, %p67_p0  ;;  %p216_p7 = scmp.lt.s32.totalorder %s925_s9, 3 }
  0x14   : > { %s1172_s2 = sld [smem:[#allocation18_spill]]  ;;  %p571_p9 = scmp.ge.s32.totalorder %s925_s9, 2 }
  0x15   : > { %p1033_p8 = pnand %p567_p5, %p216_p7  ;;  %s928_s20 = smov [#allocation7]  }
  0x16   : > { %s232_s21 = sshll.u32 %s928_s20, 4  ;;  %s1174_s3 = sld [smem:[#allocation19_spill]]  ;;  %s233_s21 = int_to_ptr.vmem [resolvable:$true] %s232_s21 }
  0x17   : > { %p617_p10 = pneg %p1033_p8  ;;  %s929_s26 = smov [#allocation9]  }
  0x18   : > { %s243_s27 = sshll.u32 %s929_s26, 4  ;;  %s930_s10 = smov 64   ;;  %s244_s27 = int_to_ptr.vmem [resolvable:$true] %s243_s27 }
  0x19   : > { %p1045_p11 = pnand %p617_p10, %p1010_p1  ;;  %s931_s11 = smov 4  }
  0x1a   : > { %s230_s18 = sshll.u32 %s1172_s2, 4  ;;  %s258_s20 = sshll.u32 %s1163_s5, 4  ;;  %s231_s18 = int_to_ptr.hbm [resolvable:$true] %s230_s18  ;;  %s259_s20 = int_to_ptr.hbm [resolvable:$true] %s258_s20 }
  0x1b   : > { %620 = dma.hbm_to_vmem [thread:$0]  (!%p1045_p11), %s231_s18, 128, %s233_s21, [#allocation8]  }
  0x1c   : > { %s241_s24 = sshll.u32 %s1174_s3, 4  ;;  %s932_s22 = smov [#allocation10]   ;;  %s242_s24 = int_to_ptr.hbm [resolvable:$true] %s241_s24 }
  0x1d   : > { %623 = dma.hbm_to_vmem [thread:$0]  (!%p1045_p11), %s242_s24, 128, %s244_s27, [#allocation8], %s930_s10, %s930_s10, %s931_s11  }
  0x1e   : > { %s260_s23 = sshll.u32 %s932_s22, 4  ;;  %s54_s18 = sadd.s32 1, %s913_s30  ;;  %s261_s23 = int_to_ptr.vmem [resolvable:$true] %s260_s23 }
  0x1f   : > { %626 = dma.hbm_to_vmem [thread:$0]  (!%p1045_p11), %s259_s20, 256, %s261_s23, [#allocation11], %s930_s10, %s930_s10, %s931_s11  }
  0x20   : > { %s42_s21 = sadd.s32 1, %s921_s0  ;;  %p61_p12 = scmp.ne.s32.totalorder %s913_s30, %s909_s29 }
  0x21   : > { %p43_p13 = scmp.ge.s32.totalorder %s42_s21, 2  ;;  %p62_p0 = scmp.eq.s32.totalorder %s925_s9, 0 }
  0x22   : > { %p1065_p3 = por %p1014_p2, %p61_p12  ;;  %p638_p5 = scmp.lt.s32.totalorder %s925_s9, 2 }
  0x23   : > { %s1184_s21 = smov (%p43_p13, %s42_s21), 0  ;;  %p1072_p7 = por %p62_p0, %p61_p12 }
  0x24   : > { %s277_s25 = sand.u32 1, %s913_s30   ;;  %s49_s27 = ssub.s32 %s921_s0, %s1184_s21 }
  0x25   : > { %p52_p10 = scmp.eq.s32.totalorder %s49_s27, 0  ;;  %s572_s10 = sshll.u32 %s277_s25, 3 }
  0x26   : > { %s573_s11 = sshll.u32 %s921_s0, 3  ;;  %s281_s22 = scalar_lea.vmem [#allocation4], %s572_s10 }
  0x27   : > { %s1081_s13 = scalar_select %p52_p10, %s913_s30, %s54_s18  }
  0x28   : > { %s286_s20 = scalar_lea.hbm %s1159_s1, %s573_s11  ;;  %s290_s23 = sshll.u32 %s281_s22, 4  ;;  %s291_s23 = int_to_ptr.vmem [resolvable:$true] %s290_s23 }
  0x29   : > { %s288_s2 = sshll.u32 %s286_s20, 4  ;;  %p628_p2 = pnand %p638_p5, %p1072_p7  ;;  %s289_s2 = int_to_ptr.hbm [resolvable:$true] %s288_s2 }
  0x2a   : > { %s278_s3 = scalar_lea.sflag [#allocation5], %s277_s25  ;;  %299 = sbr.rel (%p1033_p8) target bundleno = 354 (0x162), region = 44 }
  0x2b   : > { %630 = dma.hbm_to_vmem [thread:$0]  (!%p628_p2), %s289_s2, 128, %s291_s23, %s278_s3  }
  0x2c   : > { %s1093_s18 = sand.u32 (!%p1033_p8), 1, %s909_s29  }
  0x2d   : > { %s575_s27 = sshll.u32 (!%p1033_p8), %s1093_s18, 3  ;;  %s302_s10 = scalar_lea.sflag (!%p1033_p8), [#allocation5], %s1093_s18 }
  0x2e   : > { %s305_s11 = scalar_lea.vmem (!%p1033_p8), [#allocation4], %s575_s27 }
  0x2f   : > { %888 = dma.done.wait (%p1020_p4), %s302_s10, 128  }
  0x30   : > { %890 = vsyncadd (%p1020_p4), %s302_s10, 4294967168 }
  0x31   : > { %892 = dma.done.wait (%p1010_p1), [#allocation8], 256  }
  0x32   : > { %894 = vsyncadd (%p1010_p1), [#allocation8], 4294967040 }
  0x33   : > { %896 = dma.done.wait (%p1010_p1), [#allocation11], 256  }
  0x34   : > { %898 = vsyncadd (%p1010_p1), [#allocation11], 4294967040  ;;  %s351_s2 = sld [smem:[#allocation3 + %s917_s8]]  ;;  %v598_v0 = vld [vmem:[#allocation9] sm:$0xff]  ;;  %v353_v1 = vld [vmem:[#allocation7] sm:$0xff]  ;;  %vm372_vm1 = vcmask 130048  }
  0x35   : > { %383 = vmatpush.bf16.msra.mxu0 %v598_v0  ;;  %v354_v2 = vld [vmem:[%s305_s11] sm:$0xff]  ;;  %vm419_vm2 = vcmask 261120   ;;  %s595_s19 = sshll.u32 %s917_s8, 3  ;;  %s349_s22 = scalar_lea.vmem [#allocation12], %s575_s27 }
  0x36   : > { %v600_v6 = vld [vmem:[#allocation10 + $0x8] sm:$0xff]  ;;  %v599_v7 = vld [vmem:[#allocation10] sm:$0xff]  ;;  %s449_s16 = scalar_lea.hbm %s1165_s7, %s595_s19  ;;  %s451_s23 = sshll.u32 %s349_s22, 4  ;;  %s452_s23 = int_to_ptr.vmem [resolvable:$true] %s451_s23 }
  0x37   : > { %429 = vmatpush.bf16.msra.mxu1 %v600_v6  ;;  %v697_v8 = vld [vmem:[%s1162_s4] ss:$0 sm:$0xff]  ;;  %s453_s10 = sshll.u32 %s449_s16, 4  ;;  %s438_s11 = scalar_lea.sflag [#allocation6], %s1093_s18  ;;  %s454_s10 = int_to_ptr.hbm [resolvable:$true] %s453_s10 }
  0x38   : > { %v698_v22 = vld [vmem:[%s1164_s6] ss:$0 sm:$0xff]  ;;  %s847_s8 = sshra.s32 %s454_s10, 4  ;;  %s853_s14 = scalar_lea.hbm %s1165_s7, 16  ;;  %s848_s8 = int_to_ptr.hbm [resolvable:$true] %s847_s8 }
  0x39   : > { %p854_p12 = scmp.lt.s32.totalorder %s848_s8, %s1165_s7 }
  0x3a   : > { %p352_p8 = scmp.gt.s32.totalorder %s351_s2, 0  ;;  %s849_s2 = scalar_lea.hbm %s848_s8, 8 }
  0x3b   : > { %430 = vmatpush.bf16.msra.mxu1 %v599_v7  ;;  %p850_p1 = scmp.ne.s32.totalorder %s848_s8, %s849_s2  ;;  %p855_p13 = scmp.lt.s32.totalorder %s853_s14, %s849_s2 }
  0x3c   : > { %s355_s3 = scalar_select %p352_p8, 1, 0 }
  0x3d   : > { %p851_p4 = pnand %p850_p1, %p1065_p3  ;;  %p856_p0 = por %p855_p13, %p854_p12 }
  0x3e   : > { %v356_v3 = vstv %s355_s3 }
  0x3f   : > { %vm357_vm0 = vcmp.eq.s32.totalorder %v356_v3, 1  ;;  %p852_p11 = pneg %p851_p4 }
  0x40   : > { %v358_v4 = vsel %vm357_vm0, %v353_v1, %v354_v2 }
  0x41   : > { %v359_v5 = vpack.c.bf16 %v358_v4, %v358_v4  ;;  %p857_p5 = pnand %p856_p0, %p852_p11 }
  0x43   : > { %584 = vmatmul.msk.bf16.vlgmr.msra.gmra.mxu0 %vm372_vm1, %v359_v5 }
  0xc0   : > { %v385_v9 = vpop.f32.mrf.mxu0 }
  0xc1   : > { %v386_v10 = vadd.f32 %v697_v8, %v385_v9 }
  0xc3   : > { %v389_v11 = vmul.f32 %v386_v10, %v386_v10 }
  0xc5   : > { %v390_v12 = vmul.f32 %v389_v11, %v386_v10 }
  0xc7   : > { %v391_v13 = vmul.f32 0.044715, %v390_v12 }
  0xc8   : > { %v387_v14 = vpop.f32.mrf.mxu0 }
  0xc9   : > { %v392_v15 = vadd.f32 %v391_v13, %v386_v10 }
  0xcb   : > { %v393_v16 = vmul.f32 0.7978846, %v392_v15 }
  0xcd   : > { %699 = vtanh.f32 %v393_v16 }
  0xd3   : > { %v700_v17 = vpop.eup %699 }
  0xd4   : > { %v395_v18 = vadd.f32 1.0, %v700_v17 }
  0xd6   : > { %v396_v19 = vmul.f32 0.5, %v395_v18 }
  0xd8   : > { %v397_v20 = vmul.f32 %v396_v19, %v386_v10 }
  0xda   : > { %v398_v21 = vpack.c.bf16 %v397_v20, %v397_v20 }
  0xdc   : > { %593 = vmatmul.msk.bf16.vlgmr.msra.gmra.mxu1 %vm419_vm2, %v398_v21 }
 0x159   : > { %v432_v23 = vpop.f32.mrf.mxu1 }
 0x15a   : > { %v433_v24 = vadd.f32 %v698_v22, %v432_v23 }
 0x15c   : > { %436 = vst.msk [vmem:[%s349_s22] sm:$0xff] %vm419_vm2, %v433_v24 }
 0x15d   : > { %860 = shalt.err (!%p857_p5)
}
 0x15e   : > { %615 = dma.vmem_to_hbm [thread:$0]  (%p1065_p3), %s452_s23, 128, %s454_s10, %s438_s11  }
 0x161   : > { %v434_v25 = vpop.f32.mrf.mxu1 }
 0x162 PF: > { %s465_s18 = sand.u32 1, %s905_s28   ;;  %p632_p7 = pnand %p571_p9, %p1025_p6 }
 0x163   : > { %s466_s26 = scalar_lea.sflag [#allocation6], %s465_s18 }
 0x164   : > { %p633_p10 = pneg %p632_p7 }
 0x166   : > { %900 = dma.done.wait (%p633_p10), %s466_s26, 128  }
 0x167   : > { %902 = vsyncadd (%p633_p10), %s466_s26, 4294967168  ;;  %s33_s9 = sadd.s32 1, %s925_s9   ;;  %s1178_s28 = smov %s909_s29 }
 0x168   : > { %p30_p2 = scmp.ge.s32.totalorder %s33_s9, 4   ;;  %s1179_s29 = smov %s913_s30 }
 0x169   : > { %s1180_s30 = smov %s1081_s13  ;;  %s1181_s8 = smov %s921_s0 }
 0x16a   : > { %s1182_s0 = smov %s1184_s21  ;;  %32 = sbr.rel (!%p30_p2) target bundleno = 15 (0xf), region = 102 }
 0x16f   :  { %472 = vsyncpa [#allocation5], 1 }
 0x170   :  { %474 = vsyncpa [#allocation5 + $0x1], 1 }
 0x171   :  { %475 = vsyncpa [#allocation8], 1 }
 0x172   :  { %476 = vsyncpa [#allocation11], 1 }
 0x173   :  { %477 = vsyncpa [#allocation6], 1 }
 0x174   :  { %479 = vsyncpa [#allocation6 + $0x1], 1 }

</bundles_post_ra>
